<compile_context>
chip_gen: v7x
topology: tpu7x:2x2x1
jax: 0.10.0
libtpu: 0.0.40
codegen_flags: <defaults>
</compile_context>

<pallas_src>
import math

import jax
import jax.numpy as jnp
from jax.experimental import pallas as pl
from jax.experimental.pallas import tpu as pltpu


def _round_up(x, m):
    return ((x + m - 1) // m) * m


# ---------------------------------------------------------------------------
# Kernel
# ---------------------------------------------------------------------------
def transformer_layer_kernel(
    x_ref,       # [tm, H]  stream dtype (f32 or bf16) row tile
    wa_ref,      # [H, H]   compute dtype (folded: W3_concat @ W2)
    w1w_ref,     # [H, H]   compute dtype
    consts_ref,  # [8, H]   f32: row0=ba, row1=gamma, row2=beta, row3=w1b (rows 4-7 pad)
    out_ref,     # [tm, H]  stream dtype
):
    ba = consts_ref[0:1, :]
    gamma = consts_ref[1:2, :]
    beta = consts_ref[2:3, :]
    w1b = consts_ref[3:4, :]

    x = x_ref[...]
    xf = x.astype(jnp.float32)                       # residual kept in f32
    xc = x.astype(wa_ref.dtype)                      # MXU input

    # Fused heads + W2 (one wide MXU matmul, f32 accumulation).
    y = jnp.dot(xc, wa_ref[...], preferred_element_type=jnp.float32) + ba

    # LayerNorm over hidden dim (f32, eps=1e-5, affine).
    mean = jnp.mean(y, axis=-1, keepdims=True)
    cen = y - mean
    var = jnp.mean(cen * cen, axis=-1, keepdims=True)
    yhat = cen * jax.lax.rsqrt(var + 1e-5)
    yhat = yhat * gamma + beta

    # ReLU + W1 (second MXU matmul, f32 accumulation).
    act = jnp.maximum(yhat, 0.0).astype(w1w_ref.dtype)
    z = jnp.dot(act, w1w_ref[...], preferred_element_type=jnp.float32) + w1b

    out_ref[...] = (xf + z).astype(out_ref.dtype)


# ---------------------------------------------------------------------------
# Host-side weight folding (one time)
# ---------------------------------------------------------------------------
def fold_params(params, compute_dtype=jnp.bfloat16):
    """Fold heads + W2 into one [H, H] matmul; stack the small f32 constants into (8, H)."""
    nh, H, _ = params["w3w"].shape
    w3c = jnp.concatenate([params["w3w"][i] for i in range(nh)], axis=-1)   # [H, H]
    b3c = jnp.concatenate([params["w3b"][i] for i in range(nh)], axis=-1)   # [H]
    wa = (w3c @ params["w2w"]).astype(compute_dtype)                        # [H, H]
    ba = (b3c @ params["w2w"] + params["w2b"][0]).reshape(1, H)
    consts = jnp.concatenate(
        [
            ba,
            params["gamma"].reshape(1, H),
            params["beta"].reshape(1, H),
            params["w1b"].reshape(1, H),
            jnp.zeros((4, H), jnp.float32),          # pad to sublane multiple (8 rows)
        ],
        axis=0,
    ).astype(jnp.float32)                                                    # [8, H]
    return {
        "wa": wa,
        "w1w": params["w1w"].astype(compute_dtype),
        "consts": consts,
    }


# ---------------------------------------------------------------------------
# Wrapper
# ---------------------------------------------------------------------------
def _build_call(H, M_pad, tm_eff, stream_dtype, vmem_limit, single_buffer_consts):
    if single_buffer_consts:
        def const_spec(shape):
            # Constant index map -> fetched once; single-buffer to halve weight VMEM.
            return pl.BlockSpec(shape, lambda i: (0, 0), pipeline_mode=pl.Buffered(1))
    else:
        def const_spec(shape):
            return pl.BlockSpec(shape, lambda i: (0, 0))

    return pl.pallas_call(
        transformer_layer_kernel,
        out_shape=jax.ShapeDtypeStruct((M_pad, H), stream_dtype),
        grid_spec=pltpu.PrefetchScalarGridSpec(
            num_scalar_prefetch=0,
            grid=(M_pad // tm_eff,),
            in_specs=[
                pl.BlockSpec((tm_eff, H), lambda i: (i, 0)),   # x row tile (pipelined)
                const_spec((H, H)),                            # Wa (folded heads @ W2)
                const_spec((H, H)),                            # W1
                const_spec((8, H)),                            # ba / gamma / beta / b1
            ],
            out_specs=pl.BlockSpec((tm_eff, H), lambda i: (i, 0)),
        ),
        # Row tiles are independent -> parallel (both TCs on v7x, no-op elsewhere).
        compiler_params=pltpu.CompilerParams(
            dimension_semantics=("parallel",),
            vmem_limit_bytes=vmem_limit,
        ),
    )


def transformer_layer(x, params, *, tm=1024, compute_dtype=jnp.bfloat16):
    """x: [B, S, H] float32. params: dict of per-head & shared weights (see make_params)."""
    B, S, H = x.shape
    M = B * S
    stream_dtype = compute_dtype
    fp = fold_params(params, compute_dtype)

    x2 = x.reshape(M, H).astype(stream_dtype)

    # Row tiling: big tiles to amortize the ~0.35us per-grid-step overhead, but keep
    # at least 2 grid steps when the row count allows it (megacore sharding on v7x).
    rows8 = _round_up(M, 8)
    tm_eff = min(tm, rows8)
    if rows8 // tm_eff < 2 and rows8 >= 16:
        tm_eff = max(8, _round_up(rows8 // 2, 8))
    M_pad = _round_up(M, tm_eff)
    if M_pad != M:
        x2 = jnp.pad(x2, ((0, M_pad - M), (0, 0)))

    # Explicit VMEM budget: x-in + out double-buffered, weights (worst case double-buffered
    # so the no-Buffered fallback also fits), plus the small constants tile.
    H_pad = _round_up(H, 128)
    sb = jnp.dtype(stream_dtype).itemsize
    cb = jnp.dtype(compute_dtype).itemsize
    vmem = (4 * tm_eff * H_pad * sb          # x in + out, 2 buffers each
            + 4 * H_pad * H_pad * cb         # Wa + W1 (worst case 2 buffers each)
            + 2 * 8 * H_pad * 4)             # stacked consts
    vmem_limit = int(min(max(2 * vmem + (4 << 20), 16 << 20), 96 << 20))

    args = (x2, fp["wa"], fp["w1w"], fp["consts"])
    try:
        out = _build_call(H, M_pad, tm_eff, stream_dtype, vmem_limit, True)(*args)
    except Exception:
        # Fallback if pipeline_mode=pl.Buffered(1) is unsupported by this jax version.
        out = _build_call(H, M_pad, tm_eff, stream_dtype, vmem_limit, False)(*args)

    return out[:M].reshape(B, S, H).astype(x.dtype)


# ---------------------------------------------------------------------------
# Pure-JAX reference: mirrors the PyTorch forward EXACTLY (including the
# B1/B2/coef/softmax branch), used to validate the folded kernel.
# ---------------------------------------------------------------------------
def transformer_layer_ref(x, params):
    nh = params["b1w"].shape[0]
    outs = []
    for i in range(nh):
        xb1 = x @ params["b1w"][i] + params["b1b"][i]
        xb2 = x @ params["b2w"][i] + params["b2b"][i]
        xb1 = xb1 * params["coef"][i]
        att = xb1 * jnp.sum(xb2, axis=-1, keepdims=True)           # einsum abc,abd->abc
        att = jax.nn.softmax(att, axis=-1)
        xemb = x @ params["w3w"][i] + params["w3b"][i]
        outs.append(jnp.sum(att, axis=-1, keepdims=True) * xemb)   # einsum abc,abf->abf
    xt = jnp.concatenate(outs, axis=-1)
    y = xt @ params["w2w"] + params["w2b"][0]
    mean = jnp.mean(y, axis=-1, keepdims=True)
    var = jnp.mean((y - mean) ** 2, axis=-1, keepdims=True)
    yhat = (y - mean) / jnp.sqrt(var + 1e-5)
    yhat = yhat * params["gamma"][0] + params["beta"][0]
    z = jnp.maximum(yhat, 0.0) @ params["w1w"] + params["w1b"][0]
    return x + z


def make_params(key, hidden_dim, nheads):
    H, nh = hidden_dim, nheads
    Hh = H // nh
    ks = jax.random.split(key, 10)
    scale = 0.05
    # All weight matrices stored in [in, out] layout (x @ W  ==  PyTorch x @ W_pt.T).
    return {
        "b1w": jax.random.normal(ks[0], (nh, H, H), jnp.float32) * scale,
        "b1b": jax.random.normal(ks[1], (nh, H), jnp.float32) * scale,
        "b2w": jax.random.normal(ks[2], (nh, H, H), jnp.float32) * scale,
        "b2b": jax.random.normal(ks[3], (nh, H), jnp.float32) * scale,
        "coef": jnp.ones((nh, H), jnp.float32) / math.sqrt(H),
        "w3w": jax.random.normal(ks[4], (nh, H, Hh), jnp.float32) * scale,
        "w3b": jax.random.normal(ks[5], (nh, Hh), jnp.float32) * scale,
        "w2w": jax.random.normal(ks[6], (H, H), jnp.float32) * scale,
        "w2b": jax.random.normal(ks[7], (1, H), jnp.float32) * scale,
        "w1w": jax.random.normal(ks[8], (H, H), jnp.float32) * scale,
        "w1b": jax.random.normal(ks[9], (1, H), jnp.float32) * scale,
        "gamma": jnp.ones((1, H), jnp.float32),
        "beta": jnp.zeros((1, H), jnp.float32),
    }


if __name__ == "__main__":
    # Small shapes consistent with the module's forward (x: [B, seq, hidden]);
    # hidden chosen as 128 so I/O tiles are lane-dense.
    B, S, H, NH = 2, 8, 128, 4
    key = jax.random.PRNGKey(0)
    kx, kp = jax.random.split(key)
    x = jax.random.normal(kx, (B, S, H), jnp.float32)
    params = make_params(kp, H, NH)

    ref = transformer_layer_ref(x, params)

    # f32 weights/streams on the MXU: tight tolerance vs the full (softmax-included) reference.
    out_f32 = jax.block_until_ready(transformer_layer(x, params, compute_dtype=jnp.float32))
    assert out_f32.shape == (B, S, H)
    assert jnp.allclose(out_f32, ref, atol=1e-3, rtol=1e-3), "f32 kernel mismatch vs reference"

    # Default path: bf16 weights + activation streams (f32 accumulation): relaxed tolerance.
    out_bf16 = jax.block_until_ready(transformer_layer(x, params))
    assert out_bf16.shape == (B, S, H)
    assert jnp.allclose(out_bf16, ref, atol=1e-1, rtol=1e-1), "bf16 kernel mismatch vs reference"

    print("KERNEL_OK")
</pallas_src>

<mosaic_0001>
module attributes {stable_mosaic.version = 11 : i64} {
  func.func @transformer_layer_kernel(%arg0: i32, %arg1: memref<8x128xf32, #tpu.memory_space<vmem>>, %arg2: memref<128x128xf32, #tpu.memory_space<vmem>>, %arg3: memref<128x128xf32, #tpu.memory_space<vmem>>, %arg4: memref<8x128xf32, #tpu.memory_space<vmem>>, %arg5: memref<8x128xf32, #tpu.memory_space<vmem>>) attributes {dimension_semantics = [#tpu.dimension_semantics<parallel>], iteration_bounds = array<i64: 2>, scalar_prefetch = 0 : i64, scratch_operands = 0 : i64, tpu.core_type = #tpu.core_type<tc>, window_params = [{transform_indices = @transform_0, window_bounds = array<i64: 8, 128>}, {pipeline_mode = #tpu.pipeline_mode<synchronous>, transform_indices = @transform_1, window_bounds = array<i64: 128, 128>}, {pipeline_mode = #tpu.pipeline_mode<synchronous>, transform_indices = @transform_2, window_bounds = array<i64: 128, 128>}, {pipeline_mode = #tpu.pipeline_mode<synchronous>, transform_indices = @transform_3, window_bounds = array<i64: 8, 128>}, {transform_indices = @transform_4, window_bounds = array<i64: 8, 128>}]} {
    %c0 = arith.constant 0 : index
    %c0_0 = arith.constant 0 : index
    %0 = vector.load %arg4[%c0, %c0_0] : memref<8x128xf32, #tpu.memory_space<vmem>>, vector<1x128xf32>
    %c1 = arith.constant 1 : index
    %c0_1 = arith.constant 0 : index
    %1 = vector.load %arg4[%c1, %c0_1] : memref<8x128xf32, #tpu.memory_space<vmem>>, vector<1x128xf32>
    %c2 = arith.constant 2 : index
    %c0_2 = arith.constant 0 : index
    %2 = vector.load %arg4[%c2, %c0_2] : memref<8x128xf32, #tpu.memory_space<vmem>>, vector<1x128xf32>
    %c3 = arith.constant 3 : index
    %c0_3 = arith.constant 0 : index
    %3 = vector.load %arg4[%c3, %c0_3] : memref<8x128xf32, #tpu.memory_space<vmem>>, vector<1x128xf32>
    %c0_4 = arith.constant 0 : index
    %c0_5 = arith.constant 0 : index
    %4 = vector.load %arg1[%c0_4, %c0_5] : memref<8x128xf32, #tpu.memory_space<vmem>>, vector<8x128xf32>
    %c0_6 = arith.constant 0 : index
    %c0_7 = arith.constant 0 : index
    %5 = vector.load %arg2[%c0_6, %c0_7] : memref<128x128xf32, #tpu.memory_space<vmem>>, vector<128x128xf32>
    %cst = arith.constant dense<0.000000e+00> : vector<8x128xf32>
    %6 = tpu.matmul %4, %5, %cst {dimension_numbers = #tpu.dot_dimension_numbers<[1], [0], [0], [1], [0, 0, 1, 1], [], []>} : vector<8x128xf32>, vector<128x128xf32>, vector<8x128xf32> -> vector<8x128xf32>
    %7 = vector.broadcast %0 : vector<1x128xf32> to vector<8x128xf32>
    %8 = arith.addf %6, %7 : vector<8x128xf32>
    %cst_8 = arith.constant dense<0.000000e+00> : vector<8xf32>
    %9 = vector.multi_reduction <add>, %8, %cst_8 [1] : vector<8x128xf32> to vector<8xf32>
    %10 = vector.shape_cast %9 : vector<8xf32> to vector<8x1xf32>
    %cst_9 = arith.constant 1.280000e+02 : f32
    %11 = vector.broadcast %cst_9 : f32 to vector<8x1xf32>
    %12 = arith.divf %10, %11 : vector<8x1xf32>
    %13 = vector.broadcast %12 : vector<8x1xf32> to vector<8x128xf32>
    %14 = arith.subf %8, %13 : vector<8x128xf32>
    %15 = arith.mulf %14, %14 : vector<8x128xf32>
    %cst_10 = arith.constant dense<0.000000e+00> : vector<8xf32>
    %16 = vector.multi_reduction <add>, %15, %cst_10 [1] : vector<8x128xf32> to vector<8xf32>
    %17 = vector.shape_cast %16 : vector<8xf32> to vector<8x1xf32>
    %cst_11 = arith.constant 1.280000e+02 : f32
    %18 = vector.broadcast %cst_11 : f32 to vector<8x1xf32>
    %19 = arith.divf %17, %18 : vector<8x1xf32>
    %cst_12 = arith.constant 9.99999974E-6 : f32
    %20 = vector.broadcast %cst_12 : f32 to vector<8x1xf32>
    %21 = arith.addf %19, %20 : vector<8x1xf32>
    %22 = math.rsqrt %21 : vector<8x1xf32>
    %23 = vector.broadcast %22 : vector<8x1xf32> to vector<8x128xf32>
    %24 = arith.mulf %14, %23 : vector<8x128xf32>
    %25 = vector.broadcast %1 : vector<1x128xf32> to vector<8x128xf32>
    %26 = arith.mulf %24, %25 : vector<8x128xf32>
    %27 = vector.broadcast %2 : vector<1x128xf32> to vector<8x128xf32>
    %28 = arith.addf %26, %27 : vector<8x128xf32>
    %cst_13 = arith.constant 0.000000e+00 : f32
    %29 = vector.broadcast %cst_13 : f32 to vector<8x128xf32>
    %30 = arith.maximumf %28, %29 : vector<8x128xf32>
    %c0_14 = arith.constant 0 : index
    %c0_15 = arith.constant 0 : index
    %31 = vector.load %arg3[%c0_14, %c0_15] : memref<128x128xf32, #tpu.memory_space<vmem>>, vector<128x128xf32>
    %cst_16 = arith.constant dense<0.000000e+00> : vector<8x128xf32>
    %32 = tpu.matmul %30, %31, %cst_16 {dimension_numbers = #tpu.dot_dimension_numbers<[1], [0], [0], [1], [0, 0, 1, 1], [], []>} : vector<8x128xf32>, vector<128x128xf32>, vector<8x128xf32> -> vector<8x128xf32>
    %33 = vector.broadcast %3 : vector<1x128xf32> to vector<8x128xf32>
    %34 = arith.addf %32, %33 : vector<8x128xf32>
    %35 = arith.addf %4, %34 : vector<8x128xf32>
    %c0_17 = arith.constant 0 : index
    %c0_18 = arith.constant 0 : index
    %36 = vector.load %arg5[%c0_17, %c0_18] : memref<8x128xf32, #tpu.memory_space<vmem>>, vector<8x128xf32>
    tpu.vector_store %arg5[%c0_17, %c0_18], %35 {strides = array<i32>} : memref<8x128xf32, #tpu.memory_space<vmem>>, vector<8x128xf32>,
    return
  }
  func.func @transform_0(%arg0: i32) -> (i32, i32) {
    %c0_i32 = arith.constant 0 : i32
    %c0_i32_0 = arith.constant 0 : i32
    return %arg0, %c0_i32 : i32, i32
  }
  func.func @transform_1(%arg0: i32) -> (i32, i32) {
    %c0_i32 = arith.constant 0 : i32
    %c0_i32_0 = arith.constant 0 : i32
    %c0_i32_1 = arith.constant 0 : i32
    return %c0_i32, %c0_i32_0 : i32, i32
  }
  func.func @transform_2(%arg0: i32) -> (i32, i32) {
    %c0_i32 = arith.constant 0 : i32
    %c0_i32_0 = arith.constant 0 : i32
    %c0_i32_1 = arith.constant 0 : i32
    return %c0_i32, %c0_i32_0 : i32, i32
  }
  func.func @transform_3(%arg0: i32) -> (i32, i32) {
    %c0_i32 = arith.constant 0 : i32
    %c0_i32_0 = arith.constant 0 : i32
    %c0_i32_1 = arith.constant 0 : i32
    return %c0_i32, %c0_i32_0 : i32, i32
  }
  func.func @transform_4(%arg0: i32) -> (i32, i32) {
    %c0_i32 = arith.constant 0 : i32
    %c0_i32_0 = arith.constant 0 : i32
    return %arg0, %c0_i32 : i32, i32
  }
}

module attributes {stable_mosaic.version = 11 : i64} {
  func.func @transformer_layer_kernel(%arg0: i32, %arg1: memref<8x128xf32, #tpu.memory_space<vmem>>, %arg2: memref<128x128xf32, #tpu.memory_space<vmem>>, %arg3: memref<128x128xf32, #tpu.memory_space<vmem>>, %arg4: memref<8x128xf32, #tpu.memory_space<vmem>>, %arg5: memref<8x128xf32, #tpu.memory_space<vmem>>) attributes {dimension_semantics = [#tpu.dimension_semantics<parallel>], iteration_bounds = array<i64: 2>, scalar_prefetch = 0 : i64, scratch_operands = 0 : i64, tpu.core_type = #tpu.core_type<tc>, window_params = [{transform_indices = @transform_0, window_bounds = array<i64: 8, 128>}, {pipeline_mode = #tpu.pipeline_mode<synchronous>, transform_indices = @transform_1, window_bounds = array<i64: 128, 128>}, {pipeline_mode = #tpu.pipeline_mode<synchronous>, transform_indices = @transform_2, window_bounds = array<i64: 128, 128>}, {pipeline_mode = #tpu.pipeline_mode<synchronous>, transform_indices = @transform_3, window_bounds = array<i64: 8, 128>}, {transform_indices = @transform_4, window_bounds = array<i64: 8, 128>}]} {
    %c0 = arith.constant 0 : index
    %c0_0 = arith.constant 0 : index
    %0 = vector.load %arg4[%c0, %c0_0] : memref<8x128xf32, #tpu.memory_space<vmem>>, vector<1x128xf32>
    %c1 = arith.constant 1 : index
    %c0_1 = arith.constant 0 : index
    %1 = vector.load %arg4[%c1, %c0_1] : memref<8x128xf32, #tpu.memory_space<vmem>>, vector<1x128xf32>
    %c2 = arith.constant 2 : index
    %c0_2 = arith.constant 0 : index
    %2 = vector.load %arg4[%c2, %c0_2] : memref<8x128xf32, #tpu.memory_space<vmem>>, vector<1x128xf32>
    %c3 = arith.constant 3 : index
    %c0_3 = arith.constant 0 : index
    %3 = vector.load %arg4[%c3, %c0_3] : memref<8x128xf32, #tpu.memory_space<vmem>>, vector<1x128xf32>
    %c0_4 = arith.constant 0 : index
    %c0_5 = arith.constant 0 : index
    %4 = vector.load %arg1[%c0_4, %c0_5] : memref<8x128xf32, #tpu.memory_space<vmem>>, vector<8x128xf32>
    %c0_6 = arith.constant 0 : index
    %c0_7 = arith.constant 0 : index
    %5 = vector.load %arg2[%c0_6, %c0_7] : memref<128x128xf32, #tpu.memory_space<vmem>>, vector<128x128xf32>
    %cst = arith.constant dense<0.000000e+00> : vector<8x128xf32>
    %6 = tpu.matmul %4, %5, %cst {dimension_numbers = #tpu.dot_dimension_numbers<[1], [0], [0], [1], [0, 0, 1, 1], [], []>} : vector<8x128xf32>, vector<128x128xf32>, vector<8x128xf32> -> vector<8x128xf32>
    %7 = vector.broadcast %0 : vector<1x128xf32> to vector<8x128xf32>
    %8 = arith.addf %6, %7 : vector<8x128xf32>
    %cst_8 = arith.constant dense<0.000000e+00> : vector<8xf32>
    %9 = vector.multi_reduction <add>, %8, %cst_8 [1] : vector<8x128xf32> to vector<8xf32>
    %10 = vector.shape_cast %9 : vector<8xf32> to vector<8x1xf32>
    %cst_9 = arith.constant 1.280000e+02 : f32
    %11 = vector.broadcast %cst_9 : f32 to vector<8x1xf32>
    %12 = arith.divf %10, %11 : vector<8x1xf32>
    %13 = vector.broadcast %12 : vector<8x1xf32> to vector<8x128xf32>
    %14 = arith.subf %8, %13 : vector<8x128xf32>
    %15 = arith.mulf %14, %14 : vector<8x128xf32>
    %cst_10 = arith.constant dense<0.000000e+00> : vector<8xf32>
    %16 = vector.multi_reduction <add>, %15, %cst_10 [1] : vector<8x128xf32> to vector<8xf32>
    %17 = vector.shape_cast %16 : vector<8xf32> to vector<8x1xf32>
    %cst_11 = arith.constant 1.280000e+02 : f32
    %18 = vector.broadcast %cst_11 : f32 to vector<8x1xf32>
    %19 = arith.divf %17, %18 : vector<8x1xf32>
    %cst_12 = arith.constant 9.99999974E-6 : f32
    %20 = vector.broadcast %cst_12 : f32 to vector<8x1xf32>
    %21 = arith.addf %19, %20 : vector<8x1xf32>
    %22 = math.rsqrt %21 : vector<8x1xf32>
    %23 = vector.broadcast %22 : vector<8x1xf32> to vector<8x128xf32>
    %24 = arith.mulf %14, %23 : vector<8x128xf32>
    %25 = vector.broadcast %1 : vector<1x128xf32> to vector<8x128xf32>
    %26 = arith.mulf %24, %25 : vector<8x128xf32>
    %27 = vector.broadcast %2 : vector<1x128xf32> to vector<8x128xf32>
    %28 = arith.addf %26, %27 : vector<8x128xf32>
    %cst_13 = arith.constant 0.000000e+00 : f32
    %29 = vector.broadcast %cst_13 : f32 to vector<8x128xf32>
    %30 = arith.maximumf %28, %29 : vector<8x128xf32>
    %c0_14 = arith.constant 0 : index
    %c0_15 = arith.constant 0 : index
    %31 = vector.load %arg3[%c0_14, %c0_15] : memref<128x128xf32, #tpu.memory_space<vmem>>, vector<128x128xf32>
    %cst_16 = arith.constant dense<0.000000e+00> : vector<8x128xf32>
    %32 = tpu.matmul %30, %31, %cst_16 {dimension_numbers = #tpu.dot_dimension_numbers<[1], [0], [0], [1], [0, 0, 1, 1], [], []>} : vector<8x128xf32>, vector<128x128xf32>, vector<8x128xf32> -> vector<8x128xf32>
    %33 = vector.broadcast %3 : vector<1x128xf32> to vector<8x128xf32>
    %34 = arith.addf %32, %33 : vector<8x128xf32>
    %35 = arith.addf %4, %34 : vector<8x128xf32>
    %c0_17 = arith.constant 0 : index
    %c0_18 = arith.constant 0 : index
    %36 = vector.load %arg5[%c0_17, %c0_18] : memref<8x128xf32, #tpu.memory_space<vmem>>, vector<8x128xf32>
    tpu.vector_store %arg5[%c0_17, %c0_18], %35 {strides = array<i32>} : memref<8x128xf32, #tpu.memory_space<vmem>>, vector<8x128xf32>,
    return
  }
  func.func @transform_0(%arg0: i32) -> (i32, i32) {
    %c0_i32 = arith.constant 0 : i32
    %c0_i32_0 = arith.constant 0 : i32
    return %arg0, %c0_i32 : i32, i32
  }
  func.func @transform_1(%arg0: i32) -> (i32, i32) {
    %c0_i32 = arith.constant 0 : i32
    %c0_i32_0 = arith.constant 0 : i32
    %c0_i32_1 = arith.constant 0 : i32
    return %c0_i32, %c0_i32_0 : i32, i32
  }
  func.func @transform_2(%arg0: i32) -> (i32, i32) {
    %c0_i32 = arith.constant 0 : i32
    %c0_i32_0 = arith.constant 0 : i32
    %c0_i32_1 = arith.constant 0 : i32
    return %c0_i32, %c0_i32_0 : i32, i32
  }
  func.func @transform_3(%arg0: i32) -> (i32, i32) {
    %c0_i32 = arith.constant 0 : i32
    %c0_i32_0 = arith.constant 0 : i32
    %c0_i32_1 = arith.constant 0 : i32
    return %c0_i32, %c0_i32_0 : i32, i32
  }
  func.func @transform_4(%arg0: i32) -> (i32, i32) {
    %c0_i32 = arith.constant 0 : i32
    %c0_i32_0 = arith.constant 0 : i32
    return %arg0, %c0_i32 : i32, i32
  }
}

</mosaic_0001>

<bundles_post_ra>
// kernel: tpu_custom_call.1
= control target key start
LH: loop header
LB: loop body
LE: loop exit
PB: predicated region body
PF: predicated region fallthrough
CT: control target
= control target key end

     0   :  { %9 = vsyncpa [#allocation3], 0  ;;  %s1261_s0 = inlined_call_operand.hbm [shape: f32[16,128], index: 0, kind: input, shape index: {}]   ;;  %s1262_s1 = inlined_call_operand.hbm [shape: f32[128,128], index: 1, kind: input, shape index: {}]   ;;  %s1263_s2 = inlined_call_operand.hbm [shape: f32[128,128], index: 2, kind: input, shape index: {}]   ;;  %s1264_s3 = inlined_call_operand.vmem [shape: f32[8,128], index: 3, kind: input, shape index: {}]   ;;  %s1265_s4 = inlined_call_operand.hbm [shape: f32[16,128], index: 4, kind: output, shape index: {}]  }
   0x1   :  { %11 = vsyncpa [#allocation3 + $0x1], 0 }
   0x2   :  { %12 = vsyncpa [#allocation6], 0 }
   0x3   :  { %13 = vsyncpa [#allocation4], 0 }
   0x4   :  { %15 = vsyncpa [#allocation4 + $0x1], 0  ;;  %s993_s15 = smov 0   ;;  %s995_s16 = smov 0  }
   0x5   :  { %s997_s17 = smov 0   ;;  %s999_s18 = smov 0  }
   0x6 LB: > { %s1014_s19 = sadd.s32 4294967295, %s957_s18   ;;  %s555_s20 = sadd.s32 4294967294, %s957_s18   ;;  %s957_s18 = sphi %s999_s18, %s1285_s18   ;;  %s953_s17 = sphi %s997_s17, %s1284_s17   ;;  %s949_s16 = sphi %s995_s16, %s1283_s16   ;;  %s945_s15 = sphi %s993_s15, %s1282_s15  }
   0x7   : > { %p41_p0 = scmp.ne.s32.totalorder %s949_s16, %s945_s15  ;;  %p1266_p1 = scmp.eq.s32.totalorder %s1014_s19, 0 }
   0x8   : > { %p134_p3 = scmp.eq.s32.totalorder %s555_s20, 1  ;;  %p556_p5 = scmp.ge.s32.totalorder %s957_s18, 1 }
   0x9   : > { %p1023_p4 = por %p1266_p1, %p41_p0  ;;  %p141_p7 = scmp.lt.s32.totalorder %s957_s18, 3 }
   0xa   : > { %p1028_p6 = por %p134_p3, %p41_p0  ;;  %s959_s24 = smov [#allocation5]  }
   0xb   : > { %s1269_s21 = scalar_select %p1023_p4, 1, 0 }
   0xc   : > { %s1270_s22 = scalar_select %p1028_p6, 1, 0 }
   0xd   : > { %p1033_p8 = pnand %p556_p5, %p141_p7  ;;  %s153_s25 = sshll.u32 %s959_s24, 4  ;;  %s1037_s25 = int_to_ptr.vmem [resolvable:$true] %s153_s25 }
   0xe   : > { %s960_s27 = smov [#allocation7]   ;;  %s801_s5 = scalar_lea.hbm %s1262_s1, 2048 }
   0xf   : > { %p739_p9 = pneg %p1033_p8  ;;  %s166_s28 = sshll.u32 %s960_s27, 4  ;;  %s1048_s28 = int_to_ptr.vmem [resolvable:$true] %s166_s28 }
  0x10   : > { %p802_p12 = scmp.ne.s32.totalorder %s1262_s1, %s801_s5  ;;  %p808_p5 = scmp.lt.u32.totalorder %s801_s5, %s1262_s1 }
  0x11   : > { %p1044_p11 = pnand %p739_p9, %p1266_p1 }
  0x13   : > { %p803_p13 = pneg %p1044_p11 }
  0x15   : > { %p804_p0 = pnand %p803_p13, %p802_p12 }
  0x17   : > { %p805_p3 = pneg %p804_p0 }
  0x19   : > { %p810_p7 = pnand %p808_p5, %p805_p3 }
  0x1b   : > { %813 = shalt.err (!%p810_p7)
}
  0x1c   : > { %s814_s10 = scalar_lea.vmem %s1037_s25, 2048  ;;  %p822_p2 = scmp.lt.s32.totalorder %s1037_s25, %s1037_s25 }
  0x1d   : > { %p815_p9 = scmp.ne.s32.totalorder %s1037_s25, %s814_s10  ;;  %p823_p12 = scmp.lt.s32.totalorder %s814_s10, %s814_s10 }
  0x1f   : > { %p817_p10 = pnand %p815_p9, %p803_p13  ;;  %p824_p0 = por %p823_p12, %p822_p2 }
  0x21   : > { %p818_p1 = pneg %p817_p10 }
  0x23   : > { %p825_p6 = pnand %p824_p0, %p818_p1 }
  0x25   : > { %828 = shalt.err (!%p825_p6)
}
  0x26   : > { %s961_s11 = smov 128   ;;  %s962_s12 = smov 8  }
  0x27   : > { %742 = dma.hbm_to_vmem [thread:$0]  (!%p1044_p11), %s1262_s1, 2048, %s1037_s25, [#allocation6], %s961_s11, %s961_s11, %s962_s12  }
  0x28   : > { %s829_s27 = scalar_lea.hbm %s1263_s2, 2048 }
  0x29   : > { %p830_p2 = scmp.ne.s32.totalorder %s1263_s2, %s829_s27  ;;  %p836_p10 = scmp.lt.u32.totalorder %s829_s27, %s1263_s2 }
  0x2b   : > { %p832_p1 = pnand %p830_p2, %p803_p13 }
  0x2d   : > { %p833_p6 = pneg %p832_p1 }
  0x2f   : > { %p838_p3 = pnand %p836_p10, %p833_p6 }
  0x31   : > { %841 = shalt.err (!%p838_p3)
}
  0x32   : > { %s842_s25 = scalar_lea.vmem %s1048_s28, 2048  ;;  %p850_p12 = scmp.lt.s32.totalorder %s1048_s28, %s1048_s28 }
  0x33   : > { %p843_p5 = scmp.ne.s32.totalorder %s1048_s28, %s842_s25  ;;  %p851_p0 = scmp.lt.s32.totalorder %s842_s25, %s842_s25 }
  0x35   : > { %p845_p7 = pnand %p843_p5, %p803_p13  ;;  %p852_p2 = por %p851_p0, %p850_p12 }
  0x37   : > { %p846_p9 = pneg %p845_p7 }
  0x39   : > { %p853_p1 = pnand %p852_p2, %p846_p9 }
  0x3b   : > { %856 = shalt.err (!%p853_p1)
}
  0x3c   : > { %745 = dma.hbm_to_vmem [thread:$0]  (!%p1044_p11), %s1263_s2, 2048, %s1048_s28, [#allocation6], %s961_s11, %s961_s11, %s962_s12  }
  0x3d   : > { %s1103_s9 = sadd.s32 1, %s957_s18   ;;  %s28_s26 = sadd.s32 1, %s953_s17 }
  0x3e   : > { %s25_s10 = ssub.s32 %s957_s18, %s1103_s9  ;;  %p35_p13 = scmp.ne.s32.totalorder %s953_s17, %s949_s16 }
  0x3f   : > { %p26_p6 = scmp.eq.s32.totalorder %s25_s10, 0  ;;  %p36_p10 = scmp.eq.s32.totalorder %s957_s18, 0 }
  0x40   : > { %p1273_p3 = scmp.eq.s32.totalorder %s1014_s19, 1  ;;  %p756_p7 = scmp.lt.s32.totalorder %s957_s18, 2 }
  0x41   : > { %s1119_s14 = scalar_select %p26_p6, %s953_s17, %s28_s26  }
  0x42   : > { %p1113_p5 = por %p1273_p3, %p35_p13  ;;  %p37_p9 = por %p36_p10, %p35_p13 }
  0x43   : > { %s183_s20 = sand.u32 1, %s953_s17   ;;  %s561_s28 = sshll.u32 %s957_s18, 7 }
  0x44   : > { %s1274_s13 = scalar_select %p1113_p5, 1, 0 }
  0x45   : > { %s560_s24 = sshll.u32 %s183_s20, 3  ;;  %s1126_s27 = scalar_lea.hbm %s1261_s0, %s561_s28 }
  0x46   : > { %s187_s29 = scalar_lea.vmem [#allocation2], %s560_s24  ;;  %p1130_p11 = pnand %p756_p7, %p37_p9 }
  0x47   : > { %s194_s30 = sshll.u32 %s187_s29, 4  ;;  %s184_s6 = scalar_lea.sflag [#allocation3], %s183_s20  ;;  %s1128_s30 = int_to_ptr.vmem [resolvable:$true] %s194_s30 }
  0x48   : > { %s857_s25 = scalar_lea.hbm %s1126_s27, 128  ;;  %p859_p0 = pneg %p1130_p11 }
  0x49   : > { %p858_p12 = scmp.ne.s32.totalorder %s1126_s27, %s857_s25  ;;  %s862_s26 = scalar_lea.hbm %s1261_s0, 256 }
  0x4a   : > { %p863_p13 = scmp.lt.u32.totalorder %s1126_s27, %s1261_s0  ;;  %p864_p6 = scmp.lt.u32.totalorder %s862_s26, %s857_s25 }
  0x4b   : > { %p860_p2 = pnand %p859_p0, %p858_p12  ;;  %p866_p3 = scmp.lt.u32.totalorder %s857_s25, %s1126_s27 }
  0x4c   : > { %p865_p10 = por %p864_p6, %p863_p13 }
  0x4d   : > { %p861_p1 = pneg %p860_p2 }
  0x4e   : > { %p867_p7 = por %p866_p3, %p865_p10 }
  0x50   : > { %p868_p9 = pnand %p867_p7, %p861_p1 }
  0x52   : > { %871 = shalt.err (!%p868_p9)
}
  0x53   : > { %s872_s20 = scalar_lea.vmem %s1128_s30, 128  ;;  %s963_s28 = smov [#allocation2]  }
  0x54   : > { %p873_p12 = scmp.ne.s32.totalorder %s1128_s30, %s872_s20  ;;  %s877_s11 = sshll.u32 %s963_s28, 4  ;;  %s878_s11 = int_to_ptr.vmem [resolvable:$false] %s877_s11 }
  0x55   : > { %s879_s12 = scalar_lea.vmem %s878_s11, 256  ;;  %p880_p4 = scmp.lt.s32.totalorder %s1128_s30, %s878_s11 }
  0x56   : > { %p875_p2 = pnand %p873_p12, %p859_p0  ;;  %p881_p13 = scmp.lt.s32.totalorder %s879_s12, %s872_s20 }
  0x58   : > { %p876_p5 = pneg %p875_p2  ;;  %p882_p6 = por %p881_p13, %p880_p4 }
  0x5a   : > { %p883_p10 = pnand %p882_p6, %p876_p5 }
  0x5c   : > { %886 = shalt.err (!%p883_p10)
}
  0x5d   : > { %749 = dma.hbm_to_vmem [thread:$0]  (!%p1130_p11), %s1126_s27, 128, %s1128_s30, %s184_s6  }
  0x5e   : > { %203 = sbr.rel (%p1033_p8) target bundleno = 896 (0x380), region = 36  ;;  %s1162_s29 = sand.u32 (!%p1033_p8), 1, %s949_s16  }
  0x5f   : > { %s563_s25 = sshll.u32 (!%p1033_p8), %s1162_s29, 3  ;;  %s206_s7 = scalar_lea.sflag (!%p1033_p8), [#allocation3], %s1162_s29 }
  0x60   : > { %s1168_s8 = scalar_lea.vmem (!%p1033_p8), [#allocation2], %s563_s25  ;;  %p1276_p4 = scmp.ne.s32.totalorder (!%p1033_p8), %s1269_s21, 0 }
  0x65   : > { %932 = dma.done.wait (%p1276_p4), %s206_s7, 128  }
  0x66   : > { %934 = vsyncadd (%p1276_p4), %s206_s7, 4294967168  ;;  %p1277_p5 = scmp.eq.s32.totalorder %s1014_s19, 0 }
  0x68   : > { %936 = dma.done.wait (%p1277_p5), [#allocation6], 4096   ;;  %p1278_p8 = pmov %p1277_p5 }
  0x69   : > { %v964_v0 = vmov 0.0|0.0   ;;  %vm965_vm0 = vmmov 0   ;;  %v966_v1 = vmov 0.0   ;;  %v247_v2 = vld [vmem:[#allocation5] sm:$0xff]  ;;  %v248_v3 = vld [vmem:[#allocation5 + $0x8] sm:$0xff]  ;;  %v249_v4 = vld [vmem:[#allocation5 + $0x10] sm:$0xff] }
  0x6a   : > { %938 = vsyncadd (%p1278_p8), [#allocation6], 4294963200  ;;  %679 = vmatprep.subr.bf16.mxu0 %v964_v0  ;;  %641 = vmatprep.mubr.msk.f32.mxu0 %vm965_vm0, %v966_v1  ;;  %v680_v5 = vpack.c.bf16 %v248_v3, %v247_v2  ;;  %v250_v6 = vld [vmem:[#allocation5 + $0x18] sm:$0xff]  ;;  %v251_v8 = vld [vmem:[#allocation5 + $0x20] sm:$0xff]  ;;  %s572_s24 = sshll.u32 %s1014_s19, 7  ;;  %s241_s20 = scalar_lea.vmem [#allocation8], %s563_s25 }
  0x6b   : > { %703 = vmatprep.subr.bf16.mxu1 %v964_v0  ;;  %676 = vmatprep.mubr.msk.f32.mxu1 %vm965_vm0, %v966_v1  ;;  %v683_v7 = vpack.c.bf16 %v250_v6, %v249_v4  ;;  %v252_v9 = vld [vmem:[#allocation5 + $0x28] sm:$0xff]  ;;  %v253_v11 = vld [vmem:[#allocation5 + $0x30] sm:$0xff]  ;;  %v254_v12 = vld [vmem:[#allocation5 + $0x38] sm:$0xff]  ;;  %s466_s28 = sshll.u32 %s241_s20, 4  ;;  %s1217_s7 = scalar_lea.hbm %s1265_s4, %s572_s24  ;;  %s1219_s28 = int_to_ptr.vmem [resolvable:$true] %s466_s28 }
  0x6c   : > { %681 = vmatpush3.bf16.msra.mxu0 %v680_v5  ;;  %v686_v10 = vpack.c.bf16 %v252_v9, %v251_v8  ;;  %v689_v13 = vpack.c.bf16 %v254_v12, %v253_v11  ;;  %v255_v14 = vld [vmem:[#allocation5 + $0x40] sm:$0xff]  ;;  %v256_v15 = vld [vmem:[#allocation5 + $0x48] sm:$0xff]  ;;  %v257_v17 = vld [vmem:[#allocation5 + $0x50] sm:$0xff]  ;;  %s887_s19 = scalar_lea.vmem %s1219_s28, 128  ;;  %p1279_p0 = scmp.ne.s32.totalorder %s1274_s13, 0 }
  0x6d   : > { %682 = vmatprep.subr.bf16.mxu0 %v964_v0  ;;  %v692_v16 = vpack.c.bf16 %v256_v15, %v255_v14  ;;  %v258_v18 = vld [vmem:[#allocation5 + $0x58] sm:$0xff]  ;;  %v259_v20 = vld [vmem:[#allocation5 + $0x60] sm:$0xff]  ;;  %v260_v21 = vld [vmem:[#allocation5 + $0x68] sm:$0xff]  ;;  %p888_p11 = scmp.ne.s32.totalorder %s1219_s28, %s887_s19  ;;  %s967_s25 = smov [#allocation8]  }
  0x6e   : > { %v695_v19 = vpack.c.bf16 %v258_v18, %v257_v17  ;;  %v698_v22 = vpack.c.bf16 %v260_v21, %v259_v20  ;;  %v261_v23 = vld [vmem:[#allocation5 + $0x70] sm:$0xff]  ;;  %v262_v24 = vld [vmem:[#allocation5 + $0x78] sm:$0xff]  ;;  %v360_v31 = vld [vmem:[#allocation7] sm:$0xff]  ;;  %s891_s21 = sshll.u32 %s967_s25, 4  ;;  %s892_s21 = int_to_ptr.vmem [resolvable:$false] %s891_s21 }
  0x6f   : > { %v701_v25 = vpack.c.bf16 %v262_v24, %v261_v23  ;;  %v1188_v26 = vld [vmem:[%s1168_s8] sm:$0xff]  ;;  %v361_v32 = vld [vmem:[#allocation7 + $0x8] sm:$0xff]  ;;  %v364_v41 = vld [vmem:[#allocation7 + $0x20] sm:$0xff]  ;;  %s453_s8 = scalar_lea.sflag [#allocation4], %s1162_s29  ;;  %p889_p1 = pnand %p888_p11, %p1279_p0 }
  0x70   : > { %684 = vmatpush3.bf16.msra.mxu0 %v683_v7  ;;  %v567_v27 = vld [vmem:[%s1264_s3] ss:$0 sm:$0xff]  ;;  %v704_v34 = vpack.c.bf16 %v361_v32, %v360_v31  ;;  %v363_v35 = vld [vmem:[#allocation7 + $0x18] sm:$0xff]  ;;  %v365_v42 = vld [vmem:[#allocation7 + $0x28] sm:$0xff]  ;;  %s893_s23 = scalar_lea.vmem %s892_s21, 256  ;;  %p894_p7 = scmp.lt.s32.totalorder %s1219_s28, %s892_s21 }
  0x71   : > { %685 = vmatprep.subr.bf16.mxu0 %v964_v0  ;;  %v362_v33 = vld [vmem:[#allocation7 + $0x10] sm:$0xff]  ;;  %v710_v43 = vpack.c.bf16 %v365_v42, %v364_v41  ;;  %v367_v45 = vld [vmem:[#allocation7 + $0x38] sm:$0xff]  ;;  %v368_v47 = vld [vmem:[#allocation7 + $0x40] sm:$0xff]  ;;  %p890_p3 = pneg %p889_p1  ;;  %p895_p9 = scmp.lt.s32.totalorder %s893_s23, %s887_s19 }
  0x72   : > { %705 = vmatpush3.bf16.msra.mxu1 %v704_v34  ;;  %v707_v36 = vpack.c.bf16 %v363_v35, %v362_v33  ;;  %v366_v44 = vld [vmem:[#allocation7 + $0x30] sm:$0xff]  ;;  %v369_v48 = vld [vmem:[#allocation7 + $0x48] sm:$0xff]  ;;  %v371_v51 = vld [vmem:[#allocation7 + $0x58] sm:$0xff] }
  0x73   : > { %706 = vmatprep.subr.bf16.mxu1 %v964_v0  ;;  %v713_v46 = vpack.c.bf16 %v367_v45, %v366_v44  ;;  %v716_v49 = vpack.c.bf16 %v369_v48, %v368_v47  ;;  %v370_v50 = vld [vmem:[#allocation7 + $0x50] sm:$0xff]  ;;  %v372_v53 = vld [vmem:[#allocation7 + $0x60] sm:$0xff]  ;;  %v373_v54 = vld [vmem:[#allocation7 + $0x68] sm:$0xff]  ;;  %p896_p12 = por %p895_p9, %p894_p7 }
  0x74   : > { %687 = vmatpush3.bf16.msra.mxu0 %v686_v10  ;;  %v719_v52 = vpack.c.bf16 %v371_v51, %v370_v50  ;;  %v722_v55 = vpack.c.bf16 %v373_v54, %v372_v53  ;;  %v374_v56 = vld [vmem:[#allocation7 + $0x70] sm:$0xff]  ;;  %v375_v57 = vld [vmem:[#allocation7 + $0x78] sm:$0xff] }
  0x75   : > { %688 = vmatprep.subr.bf16.mxu0 %v964_v0  ;;  %v725_v58 = vpack.c.bf16 %v375_v57, %v374_v56  ;;  %v568_v63 = vld [vmem:[%s1264_s3 + $0x1] ss:$0 sm:$0xff]  ;;  %v569_v2 = vld [vmem:[%s1264_s3 + $0x2] ss:$0 sm:$0xff]  ;;  %v570_v5 = vld [vmem:[%s1264_s3 + $0x3] ss:$0 sm:$0xff]  ;;  %p897_p2 = pnand %p896_p12, %p890_p3 }
  0x76   : > { %708 = vmatpush3.bf16.msra.mxu1 %v707_v36 }
  0x77   : > { %709 = vmatprep.subr.bf16.mxu1 %v964_v0 }
  0x78   : > { %690 = vmatpush3.bf16.msra.mxu0 %v689_v13 }
  0x79   : > { %691 = vmatprep.subr.bf16.mxu0 %v964_v0 }
  0x7a   : > { %711 = vmatpush3.bf16.msra.mxu1 %v710_v43 }
  0x7b   : > { %712 = vmatprep.subr.bf16.mxu1 %v964_v0 }
  0x7c   : > { %693 = vmatpush3.bf16.msra.mxu0 %v692_v16 }
  0x7d   : > { %694 = vmatprep.subr.bf16.mxu0 %v964_v0 }
  0x7e   : > { %714 = vmatpush3.bf16.msra.mxu1 %v713_v46 }
  0x7f   : > { %715 = vmatprep.subr.bf16.mxu1 %v964_v0 }
  0x80   : > { %696 = vmatpush3.bf16.msra.mxu0 %v695_v19 }
  0x81   : > { %697 = vmatprep.subr.bf16.mxu0 %v964_v0 }
  0x82   : > { %717 = vmatpush3.bf16.msra.mxu1 %v716_v49 }
  0x83   : > { %718 = vmatprep.subr.bf16.mxu1 %v964_v0 }
  0x84   : > { %699 = vmatpush3.bf16.msra.mxu0 %v698_v22 }
  0x85   : > { %700 = vmatprep.subr.bf16.mxu0 %v964_v0 }
  0x86   : > { %720 = vmatpush3.bf16.msra.mxu1 %v719_v52 }
  0x87   : > { %721 = vmatprep.subr.bf16.mxu1 %v964_v0 }
  0x88   : > { %702 = vmatpush3.bf16.msra.mxu0 %v701_v25 }
  0x8a   : > { %723 = vmatpush3.bf16.msra.mxu1 %v722_v55 }
  0x8b   : > { %642 = vmatmul.mubr.f32.vlgmr.msra.gmra.mrb[0].mxu0 %v1188_v26  ;;  %724 = vmatprep.subr.bf16.mxu1 %v964_v0 }
  0x8e   : > { %726 = vmatpush3.bf16.msra.mxu1 %v725_v58 }
 0x15e   : > { %v333_v28 = vpop.f32.mrb[0].mxu0 }
 0x15f   : > { %v334_v29 = vadd.f32 %v567_v27, %v333_v28  ;;  %v643_v30 = vpop.f32.mrb[1].mxu0 }
 0x161   : > { %337 = vadd.xlane.f32.xlu0 %v334_v29 }
 0x1ee   : > { %v338_v37 = vpop.xlane.xlu0 %337 }
 0x1ef   : > { %v340_v38 = vmul.f32 0.0078125, %v338_v37 }
 0x1f1   : > { %v341_v39 = vsub.f32 %v334_v29, %v340_v38 }
 0x1f3   : > { %v342_v40 = vmul.f32 %v341_v39, %v341_v39 }
 0x1f5   : > { %343 = vadd.xlane.f32.xlu0 %v342_v40 }
 0x282   : > { %v344_v59 = vpop.xlane.xlu0 %343 }
 0x283   : > { %v345_v60 = vmul.f32 0.0078125, %v344_v59 }
 0x285   : > { %v346_v61 = vadd.f32 1e-05, %v345_v60 }
 0x287   : > { %799 = vrsqrt.f32 %v346_v61 }
 0x291   : > { %v800_v62 = vpop.eup %799 }
 0x292   : > { %v348_v1 = vmul.f32 %v800_v62, %v341_v39 }
 0x294   : > { %v353_v3 = vmul.f32 %v568_v63, %v348_v1 }
 0x296   : > { %v358_v0 = vadd.f32 %v569_v2, %v353_v3 }
 0x298   : > { %v359_v4 = vmax.f32 %v358_v0, 0.0 }
 0x29a   : > { %677 = vmatmul.mubr.f32.vlgmr.msra.gmra.mrb[0].mxu1 %v359_v4 }
 0x36d   : > { %v446_v6 = vpop.f32.mrb[0].mxu1 }
 0x36e   : > { %v447_v7 = vadd.f32 %v570_v5, %v446_v6  ;;  %v678_v8 = vpop.f32.mrb[1].mxu1 }
 0x370   : > { %v450_v9 = vadd.f32 %v447_v7, %v1188_v26 }
 0x372   : > { %451 = vst [vmem:[%s241_s20] sm:$0xff] %v450_v9 }
 0x373   : > { %900 = shalt.err (!%p897_p2)
}
 0x374   : > { %s901_s29 = scalar_lea.hbm %s1217_s7, 128  ;;  %s905_s5 = scalar_lea.hbm %s1265_s4, 256 }
 0x375   : > { %p902_p13 = scmp.ne.s32.totalorder %s1217_s7, %s901_s29  ;;  %p906_p4 = scmp.lt.u32.totalorder %s1217_s7, %s1265_s4 }
 0x376   : > { %p907_p5 = scmp.lt.u32.totalorder %s905_s5, %s901_s29  ;;  %p909_p11 = scmp.lt.u32.totalorder %s901_s29, %s1217_s7 }
 0x377   : > { %p903_p6 = pnand %p902_p13, %p1279_p0 }
 0x378   : > { %p908_p8 = por %p907_p5, %p906_p4 }
 0x379   : > { %p904_p10 = pneg %p903_p6 }
 0x37a   : > { %p910_p1 = por %p909_p11, %p908_p8 }
 0x37c   : > { %p911_p3 = pnand %p910_p1, %p904_p10 }
 0x37e   : > { %914 = shalt.err (!%p911_p3)
}
 0x37f   : > { %737 = dma.vmem_to_hbm [thread:$0]  (%p1279_p0), %s1219_s28, 128, %s1217_s7, %s453_s8  }
 0x380 PF: > { %s478_s10 = sand.u32 1, %s945_s15   ;;  %p1280_p7 = scmp.ne.s32.totalorder %s1270_s22, 0 }
 0x381   : > { %p1281_p9 = scmp.ge.s32.totalorder %s957_s18, 2  ;;  %s479_s24 = scalar_lea.sflag [#allocation4], %s478_s10 }
 0x383   : > { %p751_p12 = pnand %p1281_p9, %p1280_p7 }
 0x385   : > { %940 = dma.done.wait (!%p751_p12), %s479_s24, 128  }
 0x386   : > { %942 = vsyncadd (!%p751_p12), %s479_s24, 4294967168  ;;  %p18_p2 = scmp.ge.s32.totalorder %s1103_s9, 4   ;;  %s1282_s15 = smov %s949_s16 }
 0x387   : > { %s1283_s16 = smov %s953_s17  ;;  %s1284_s17 = smov %s1119_s14 }
 0x388   : > { %s1285_s18 = smov %s1103_s9  ;;  %20 = sbr.rel (!%p18_p2) target bundleno = 6 (0x6), region = 89 }
 0x38f   :  { %484 = vsyncpa [#allocation3], 1 }
 0x390   :  { %486 = vsyncpa [#allocation3 + $0x1], 1 }
 0x391   :  { %487 = vsyncpa [#allocation6], 1 }
 0x392   :  { %488 = vsyncpa [#allocation4], 1 }
 0x393   :  { %490 = vsyncpa [#allocation4 + $0x1], 1 }

// kernel: tpu_custom_call.1
= control target key start
LH: loop header
LB: loop body
LE: loop exit
PB: predicated region body
PF: predicated region fallthrough
CT: control target
= control target key end

     0   :  { %9 = vsyncpa [#allocation3], 0  ;;  %s1261_s0 = inlined_call_operand.hbm [shape: f32[16,128], index: 0, kind: input, shape index: {}]   ;;  %s1262_s1 = inlined_call_operand.hbm [shape: f32[128,128], index: 1, kind: input, shape index: {}]   ;;  %s1263_s2 = inlined_call_operand.hbm [shape: f32[128,128], index: 2, kind: input, shape index: {}]   ;;  %s1264_s3 = inlined_call_operand.vmem [shape: f32[8,128], index: 3, kind: input, shape index: {}]   ;;  %s1265_s4 = inlined_call_operand.hbm [shape: f32[16,128], index: 4, kind: output, shape index: {}]  }
   0x1   :  { %11 = vsyncpa [#allocation3 + $0x1], 0 }
   0x2   :  { %12 = vsyncpa [#allocation6], 0 }
   0x3   :  { %13 = vsyncpa [#allocation4], 0 }
   0x4   :  { %15 = vsyncpa [#allocation4 + $0x1], 0  ;;  %s993_s15 = smov 0   ;;  %s995_s16 = smov 0  }
   0x5   :  { %s997_s17 = smov 0   ;;  %s999_s18 = smov 0  }
   0x6 LB: > { %s1014_s19 = sadd.s32 4294967295, %s957_s18   ;;  %s555_s20 = sadd.s32 4294967294, %s957_s18   ;;  %s957_s18 = sphi %s999_s18, %s1285_s18   ;;  %s953_s17 = sphi %s997_s17, %s1284_s17   ;;  %s949_s16 = sphi %s995_s16, %s1283_s16   ;;  %s945_s15 = sphi %s993_s15, %s1282_s15  }
   0x7   : > { %p41_p0 = scmp.ne.s32.totalorder %s949_s16, %s945_s15  ;;  %p1266_p1 = scmp.eq.s32.totalorder %s1014_s19, 0 }
   0x8   : > { %p134_p3 = scmp.eq.s32.totalorder %s555_s20, 1  ;;  %p556_p5 = scmp.ge.s32.totalorder %s957_s18, 1 }
   0x9   : > { %p1023_p4 = por %p1266_p1, %p41_p0  ;;  %p141_p7 = scmp.lt.s32.totalorder %s957_s18, 3 }
   0xa   : > { %p1028_p6 = por %p134_p3, %p41_p0  ;;  %s959_s24 = smov [#allocation5]  }
   0xb   : > { %s1269_s21 = scalar_select %p1023_p4, 1, 0 }
   0xc   : > { %s1270_s22 = scalar_select %p1028_p6, 1, 0 }
   0xd   : > { %p1033_p8 = pnand %p556_p5, %p141_p7  ;;  %s153_s25 = sshll.u32 %s959_s24, 4  ;;  %s1037_s25 = int_to_ptr.vmem [resolvable:$true] %s153_s25 }
   0xe   : > { %s960_s27 = smov [#allocation7]   ;;  %s801_s5 = scalar_lea.hbm %s1262_s1, 2048 }
   0xf   : > { %p739_p9 = pneg %p1033_p8  ;;  %s166_s28 = sshll.u32 %s960_s27, 4  ;;  %s1048_s28 = int_to_ptr.vmem [resolvable:$true] %s166_s28 }
  0x10   : > { %p802_p12 = scmp.ne.s32.totalorder %s1262_s1, %s801_s5  ;;  %p808_p5 = scmp.lt.u32.totalorder %s801_s5, %s1262_s1 }
  0x11   : > { %p1044_p11 = pnand %p739_p9, %p1266_p1 }
  0x13   : > { %p803_p13 = pneg %p1044_p11 }
  0x15   : > { %p804_p0 = pnand %p803_p13, %p802_p12 }
  0x17   : > { %p805_p3 = pneg %p804_p0 }
  0x19   : > { %p810_p7 = pnand %p808_p5, %p805_p3 }
  0x1b   : > { %813 = shalt.err (!%p810_p7)
}
  0x1c   : > { %s814_s10 = scalar_lea.vmem %s1037_s25, 2048  ;;  %p822_p2 = scmp.lt.s32.totalorder %s1037_s25, %s1037_s25 }
  0x1d   : > { %p815_p9 = scmp.ne.s32.totalorder %s1037_s25, %s814_s10  ;;  %p823_p12 = scmp.lt.s32.totalorder %s814_s10, %s814_s10 }
  0x1f   : > { %p817_p10 = pnand %p815_p9, %p803_p13  ;;  %p824_p0 = por %p823_p12, %p822_p2 }
  0x21   : > { %p818_p1 = pneg %p817_p10 }
  0x23   : > { %p825_p6 = pnand %p824_p0, %p818_p1 }
  0x25   : > { %828 = shalt.err (!%p825_p6)
}
  0x26   : > { %s961_s11 = smov 128   ;;  %s962_s12 = smov 8  }
  0x27   : > { %742 = dma.hbm_to_vmem [thread:$0]  (!%p1044_p11), %s1262_s1, 2048, %s1037_s25, [#allocation6], %s961_s11, %s961_s11, %s962_s12  }
  0x28   : > { %s829_s27 = scalar_lea.hbm %s1263_s2, 2048 }
  0x29   : > { %p830_p2 = scmp.ne.s32.totalorder %s1263_s2, %s829_s27  ;;  %p836_p10 = scmp.lt.u32.totalorder %s829_s27, %s1263_s2 }
  0x2b   : > { %p832_p1 = pnand %p830_p2, %p803_p13 }
  0x2d   : > { %p833_p6 = pneg %p832_p1 }
  0x2f   : > { %p838_p3 = pnand %p836_p10, %p833_p6 }
  0x31   : > { %841 = shalt.err (!%p838_p3)
}
  0x32   : > { %s842_s25 = scalar_lea.vmem %s1048_s28, 2048  ;;  %p850_p12 = scmp.lt.s32.totalorder %s1048_s28, %s1048_s28 }
  0x33   : > { %p843_p5 = scmp.ne.s32.totalorder %s1048_s28, %s842_s25  ;;  %p851_p0 = scmp.lt.s32.totalorder %s842_s25, %s842_s25 }
  0x35   : > { %p845_p7 = pnand %p843_p5, %p803_p13  ;;  %p852_p2 = por %p851_p0, %p850_p12 }
  0x37   : > { %p846_p9 = pneg %p845_p7 }
  0x39   : > { %p853_p1 = pnand %p852_p2, %p846_p9 }
  0x3b   : > { %856 = shalt.err (!%p853_p1)
}
  0x3c   : > { %745 = dma.hbm_to_vmem [thread:$0]  (!%p1044_p11), %s1263_s2, 2048, %s1048_s28, [#allocation6], %s961_s11, %s961_s11, %s962_s12  }
  0x3d   : > { %s1103_s9 = sadd.s32 1, %s957_s18   ;;  %s28_s26 = sadd.s32 1, %s953_s17 }
  0x3e   : > { %s25_s10 = ssub.s32 %s957_s18, %s1103_s9  ;;  %p35_p13 = scmp.ne.s32.totalorder %s953_s17, %s949_s16 }
  0x3f   : > { %p26_p6 = scmp.eq.s32.totalorder %s25_s10, 0  ;;  %p36_p10 = scmp.eq.s32.totalorder %s957_s18, 0 }
  0x40   : > { %p1273_p3 = scmp.eq.s32.totalorder %s1014_s19, 1  ;;  %p756_p7 = scmp.lt.s32.totalorder %s957_s18, 2 }
  0x41   : > { %s1119_s14 = scalar_select %p26_p6, %s953_s17, %s28_s26  }
  0x42   : > { %p1113_p5 = por %p1273_p3, %p35_p13  ;;  %p37_p9 = por %p36_p10, %p35_p13 }
  0x43   : > { %s183_s20 = sand.u32 1, %s953_s17   ;;  %s561_s28 = sshll.u32 %s957_s18, 7 }
  0x44   : > { %s1274_s13 = scalar_select %p1113_p5, 1, 0 }
  0x45   : > { %s560_s24 = sshll.u32 %s183_s20, 3  ;;  %s1126_s27 = scalar_lea.hbm %s1261_s0, %s561_s28 }
  0x46   : > { %s187_s29 = scalar_lea.vmem [#allocation2], %s560_s24  ;;  %p1130_p11 = pnand %p756_p7, %p37_p9 }
  0x47   : > { %s194_s30 = sshll.u32 %s187_s29, 4  ;;  %s184_s6 = scalar_lea.sflag [#allocation3], %s183_s20  ;;  %s1128_s30 = int_to_ptr.vmem [resolvable:$true] %s194_s30 }
  0x48   : > { %s857_s25 = scalar_lea.hbm %s1126_s27, 128  ;;  %p859_p0 = pneg %p1130_p11 }
  0x49   : > { %p858_p12 = scmp.ne.s32.totalorder %s1126_s27, %s857_s25  ;;  %s862_s26 = scalar_lea.hbm %s1261_s0, 256 }
  0x4a   : > { %p863_p13 = scmp.lt.u32.totalorder %s1126_s27, %s1261_s0  ;;  %p864_p6 = scmp.lt.u32.totalorder %s862_s26, %s857_s25 }
  0x4b   : > { %p860_p2 = pnand %p859_p0, %p858_p12  ;;  %p866_p3 = scmp.lt.u32.totalorder %s857_s25, %s1126_s27 }
  0x4c   : > { %p865_p10 = por %p864_p6, %p863_p13 }
  0x4d   : > { %p861_p1 = pneg %p860_p2 }
  0x4e   : > { %p867_p7 = por %p866_p3, %p865_p10 }
  0x50   : > { %p868_p9 = pnand %p867_p7, %p861_p1 }
  0x52   : > { %871 = shalt.err (!%p868_p9)
}
  0x53   : > { %s872_s20 = scalar_lea.vmem %s1128_s30, 128  ;;  %s963_s28 = smov [#allocation2]  }
  0x54   : > { %p873_p12 = scmp.ne.s32.totalorder %s1128_s30, %s872_s20  ;;  %s877_s11 = sshll.u32 %s963_s28, 4  ;;  %s878_s11 = int_to_ptr.vmem [resolvable:$false] %s877_s11 }
  0x55   : > { %s879_s12 = scalar_lea.vmem %s878_s11, 256  ;;  %p880_p4 = scmp.lt.s32.totalorder %s1128_s30, %s878_s11 }
  0x56   : > { %p875_p2 = pnand %p873_p12, %p859_p0  ;;  %p881_p13 = scmp.lt.s32.totalorder %s879_s12, %s872_s20 }
  0x58   : > { %p876_p5 = pneg %p875_p2  ;;  %p882_p6 = por %p881_p13, %p880_p4 }
  0x5a   : > { %p883_p10 = pnand %p882_p6, %p876_p5 }
  0x5c   : > { %886 = shalt.err (!%p883_p10)
}
  0x5d   : > { %749 = dma.hbm_to_vmem [thread:$0]  (!%p1130_p11), %s1126_s27, 128, %s1128_s30, %s184_s6  }
  0x5e   : > { %203 = sbr.rel (%p1033_p8) target bundleno = 896 (0x380), region = 36  ;;  %s1162_s29 = sand.u32 (!%p1033_p8), 1, %s949_s16  }
  0x5f   : > { %s563_s25 = sshll.u32 (!%p1033_p8), %s1162_s29, 3  ;;  %s206_s7 = scalar_lea.sflag (!%p1033_p8), [#allocation3], %s1162_s29 }
  0x60   : > { %s1168_s8 = scalar_lea.vmem (!%p1033_p8), [#allocation2], %s563_s25  ;;  %p1276_p4 = scmp.ne.s32.totalorder (!%p1033_p8), %s1269_s21, 0 }
  0x65   : > { %932 = dma.done.wait (%p1276_p4), %s206_s7, 128  }
  0x66   : > { %934 = vsyncadd (%p1276_p4), %s206_s7, 4294967168  ;;  %p1277_p5 = scmp.eq.s32.totalorder %s1014_s19, 0 }
  0x68   : > { %936 = dma.done.wait (%p1277_p5), [#allocation6], 4096   ;;  %p1278_p8 = pmov %p1277_p5 }
  0x69   : > { %v964_v0 = vmov 0.0|0.0   ;;  %vm965_vm0 = vmmov 0   ;;  %v966_v1 = vmov 0.0   ;;  %v247_v2 = vld [vmem:[#allocation5] sm:$0xff]  ;;  %v248_v3 = vld [vmem:[#allocation5 + $0x8] sm:$0xff]  ;;  %v249_v4 = vld [vmem:[#allocation5 + $0x10] sm:$0xff] }
  0x6a   : > { %938 = vsyncadd (%p1278_p8), [#allocation6], 4294963200  ;;  %679 = vmatprep.subr.bf16.mxu0 %v964_v0  ;;  %641 = vmatprep.mubr.msk.f32.mxu0 %vm965_vm0, %v966_v1  ;;  %v680_v5 = vpack.c.bf16 %v248_v3, %v247_v2  ;;  %v250_v6 = vld [vmem:[#allocation5 + $0x18] sm:$0xff]  ;;  %v251_v8 = vld [vmem:[#allocation5 + $0x20] sm:$0xff]  ;;  %s572_s24 = sshll.u32 %s1014_s19, 7  ;;  %s241_s20 = scalar_lea.vmem [#allocation8], %s563_s25 }
  0x6b   : > { %703 = vmatprep.subr.bf16.mxu1 %v964_v0  ;;  %676 = vmatprep.mubr.msk.f32.mxu1 %vm965_vm0, %v966_v1  ;;  %v683_v7 = vpack.c.bf16 %v250_v6, %v249_v4  ;;  %v252_v9 = vld [vmem:[#allocation5 + $0x28] sm:$0xff]  ;;  %v253_v11 = vld [vmem:[#allocation5 + $0x30] sm:$0xff]  ;;  %v254_v12 = vld [vmem:[#allocation5 + $0x38] sm:$0xff]  ;;  %s466_s28 = sshll.u32 %s241_s20, 4  ;;  %s1217_s7 = scalar_lea.hbm %s1265_s4, %s572_s24  ;;  %s1219_s28 = int_to_ptr.vmem [resolvable:$true] %s466_s28 }
  0x6c   : > { %681 = vmatpush3.bf16.msra.mxu0 %v680_v5  ;;  %v686_v10 = vpack.c.bf16 %v252_v9, %v251_v8  ;;  %v689_v13 = vpack.c.bf16 %v254_v12, %v253_v11  ;;  %v255_v14 = vld [vmem:[#allocation5 + $0x40] sm:$0xff]  ;;  %v256_v15 = vld [vmem:[#allocation5 + $0x48] sm:$0xff]  ;;  %v257_v17 = vld [vmem:[#allocation5 + $0x50] sm:$0xff]  ;;  %s887_s19 = scalar_lea.vmem %s1219_s28, 128  ;;  %p1279_p0 = scmp.ne.s32.totalorder %s1274_s13, 0 }
  0x6d   : > { %682 = vmatprep.subr.bf16.mxu0 %v964_v0  ;;  %v692_v16 = vpack.c.bf16 %v256_v15, %v255_v14  ;;  %v258_v18 = vld [vmem:[#allocation5 + $0x58] sm:$0xff]  ;;  %v259_v20 = vld [vmem:[#allocation5 + $0x60] sm:$0xff]  ;;  %v260_v21 = vld [vmem:[#allocation5 + $0x68] sm:$0xff]  ;;  %p888_p11 = scmp.ne.s32.totalorder %s1219_s28, %s887_s19  ;;  %s967_s25 = smov [#allocation8]  }
  0x6e   : > { %v695_v19 = vpack.c.bf16 %v258_v18, %v257_v17  ;;  %v698_v22 = vpack.c.bf16 %v260_v21, %v259_v20  ;;  %v261_v23 = vld [vmem:[#allocation5 + $0x70] sm:$0xff]  ;;  %v262_v24 = vld [vmem:[#allocation5 + $0x78] sm:$0xff]  ;;  %v360_v31 = vld [vmem:[#allocation7] sm:$0xff]  ;;  %s891_s21 = sshll.u32 %s967_s25, 4  ;;  %s892_s21 = int_to_ptr.vmem [resolvable:$false] %s891_s21 }
  0x6f   : > { %v701_v25 = vpack.c.bf16 %v262_v24, %v261_v23  ;;  %v1188_v26 = vld [vmem:[%s1168_s8] sm:$0xff]  ;;  %v361_v32 = vld [vmem:[#allocation7 + $0x8] sm:$0xff]  ;;  %v364_v41 = vld [vmem:[#allocation7 + $0x20] sm:$0xff]  ;;  %s453_s8 = scalar_lea.sflag [#allocation4], %s1162_s29  ;;  %p889_p1 = pnand %p888_p11, %p1279_p0 }
  0x70   : > { %684 = vmatpush3.bf16.msra.mxu0 %v683_v7  ;;  %v567_v27 = vld [vmem:[%s1264_s3] ss:$0 sm:$0xff]  ;;  %v704_v34 = vpack.c.bf16 %v361_v32, %v360_v31  ;;  %v363_v35 = vld [vmem:[#allocation7 + $0x18] sm:$0xff]  ;;  %v365_v42 = vld [vmem:[#allocation7 + $0x28] sm:$0xff]  ;;  %s893_s23 = scalar_lea.vmem %s892_s21, 256  ;;  %p894_p7 = scmp.lt.s32.totalorder %s1219_s28, %s892_s21 }
  0x71   : > { %685 = vmatprep.subr.bf16.mxu0 %v964_v0  ;;  %v362_v33 = vld [vmem:[#allocation7 + $0x10] sm:$0xff]  ;;  %v710_v43 = vpack.c.bf16 %v365_v42, %v364_v41  ;;  %v367_v45 = vld [vmem:[#allocation7 + $0x38] sm:$0xff]  ;;  %v368_v47 = vld [vmem:[#allocation7 + $0x40] sm:$0xff]  ;;  %p890_p3 = pneg %p889_p1  ;;  %p895_p9 = scmp.lt.s32.totalorder %s893_s23, %s887_s19 }
  0x72   : > { %705 = vmatpush3.bf16.msra.mxu1 %v704_v34  ;;  %v707_v36 = vpack.c.bf16 %v363_v35, %v362_v33  ;;  %v366_v44 = vld [vmem:[#allocation7 + $0x30] sm:$0xff]  ;;  %v369_v48 = vld [vmem:[#allocation7 + $0x48] sm:$0xff]  ;;  %v371_v51 = vld [vmem:[#allocation7 + $0x58] sm:$0xff] }
  0x73   : > { %706 = vmatprep.subr.bf16.mxu1 %v964_v0  ;;  %v713_v46 = vpack.c.bf16 %v367_v45, %v366_v44  ;;  %v716_v49 = vpack.c.bf16 %v369_v48, %v368_v47  ;;  %v370_v50 = vld [vmem:[#allocation7 + $0x50] sm:$0xff]  ;;  %v372_v53 = vld [vmem:[#allocation7 + $0x60] sm:$0xff]  ;;  %v373_v54 = vld [vmem:[#allocation7 + $0x68] sm:$0xff]  ;;  %p896_p12 = por %p895_p9, %p894_p7 }
  0x74   : > { %687 = vmatpush3.bf16.msra.mxu0 %v686_v10  ;;  %v719_v52 = vpack.c.bf16 %v371_v51, %v370_v50  ;;  %v722_v55 = vpack.c.bf16 %v373_v54, %v372_v53  ;;  %v374_v56 = vld [vmem:[#allocation7 + $0x70] sm:$0xff]  ;;  %v375_v57 = vld [vmem:[#allocation7 + $0x78] sm:$0xff] }
  0x75   : > { %688 = vmatprep.subr.bf16.mxu0 %v964_v0  ;;  %v725_v58 = vpack.c.bf16 %v375_v57, %v374_v56  ;;  %v568_v63 = vld [vmem:[%s1264_s3 + $0x1] ss:$0 sm:$0xff]  ;;  %v569_v2 = vld [vmem:[%s1264_s3 + $0x2] ss:$0 sm:$0xff]  ;;  %v570_v5 = vld [vmem:[%s1264_s3 + $0x3] ss:$0 sm:$0xff]  ;;  %p897_p2 = pnand %p896_p12, %p890_p3 }
  0x76   : > { %708 = vmatpush3.bf16.msra.mxu1 %v707_v36 }
  0x77   : > { %709 = vmatprep.subr.bf16.mxu1 %v964_v0 }
  0x78   : > { %690 = vmatpush3.bf16.msra.mxu0 %v689_v13 }
  0x79   : > { %691 = vmatprep.subr.bf16.mxu0 %v964_v0 }
  0x7a   : > { %711 = vmatpush3.bf16.msra.mxu1 %v710_v43 }
  0x7b   : > { %712 = vmatprep.subr.bf16.mxu1 %v964_v0 }
  0x7c   : > { %693 = vmatpush3.bf16.msra.mxu0 %v692_v16 }
  0x7d   : > { %694 = vmatprep.subr.bf16.mxu0 %v964_v0 }
  0x7e   : > { %714 = vmatpush3.bf16.msra.mxu1 %v713_v46 }
  0x7f   : > { %715 = vmatprep.subr.bf16.mxu1 %v964_v0 }
  0x80   : > { %696 = vmatpush3.bf16.msra.mxu0 %v695_v19 }
  0x81   : > { %697 = vmatprep.subr.bf16.mxu0 %v964_v0 }
  0x82   : > { %717 = vmatpush3.bf16.msra.mxu1 %v716_v49 }
  0x83   : > { %718 = vmatprep.subr.bf16.mxu1 %v964_v0 }
  0x84   : > { %699 = vmatpush3.bf16.msra.mxu0 %v698_v22 }
  0x85   : > { %700 = vmatprep.subr.bf16.mxu0 %v964_v0 }
  0x86   : > { %720 = vmatpush3.bf16.msra.mxu1 %v719_v52 }
  0x87   : > { %721 = vmatprep.subr.bf16.mxu1 %v964_v0 }
  0x88   : > { %702 = vmatpush3.bf16.msra.mxu0 %v701_v25 }
  0x8a   : > { %723 = vmatpush3.bf16.msra.mxu1 %v722_v55 }
  0x8b   : > { %642 = vmatmul.mubr.f32.vlgmr.msra.gmra.mrb[0].mxu0 %v1188_v26  ;;  %724 = vmatprep.subr.bf16.mxu1 %v964_v0 }
  0x8e   : > { %726 = vmatpush3.bf16.msra.mxu1 %v725_v58 }
 0x15e   : > { %v333_v28 = vpop.f32.mrb[0].mxu0 }
 0x15f   : > { %v334_v29 = vadd.f32 %v567_v27, %v333_v28  ;;  %v643_v30 = vpop.f32.mrb[1].mxu0 }
 0x161   : > { %337 = vadd.xlane.f32.xlu0 %v334_v29 }
 0x1ee   : > { %v338_v37 = vpop.xlane.xlu0 %337 }
 0x1ef   : > { %v340_v38 = vmul.f32 0.0078125, %v338_v37 }
 0x1f1   : > { %v341_v39 = vsub.f32 %v334_v29, %v340_v38 }
 0x1f3   : > { %v342_v40 = vmul.f32 %v341_v39, %v341_v39 }
 0x1f5   : > { %343 = vadd.xlane.f32.xlu0 %v342_v40 }
 0x282   : > { %v344_v59 = vpop.xlane.xlu0 %343 }
 0x283   : > { %v345_v60 = vmul.f32 0.0078125, %v344_v59 }
 0x285   : > { %v346_v61 = vadd.f32 1e-05, %v345_v60 }
 0x287   : > { %799 = vrsqrt.f32 %v346_v61 }
 0x291   : > { %v800_v62 = vpop.eup %799 }
 0x292   : > { %v348_v1 = vmul.f32 %v800_v62, %v341_v39 }
 0x294   : > { %v353_v3 = vmul.f32 %v568_v63, %v348_v1 }
 0x296   : > { %v358_v0 = vadd.f32 %v569_v2, %v353_v3 }
 0x298   : > { %v359_v4 = vmax.f32 %v358_v0, 0.0 }
 0x29a   : > { %677 = vmatmul.mubr.f32.vlgmr.msra.gmra.mrb[0].mxu1 %v359_v4 }
 0x36d   : > { %v446_v6 = vpop.f32.mrb[0].mxu1 }
 0x36e   : > { %v447_v7 = vadd.f32 %v570_v5, %v446_v6  ;;  %v678_v8 = vpop.f32.mrb[1].mxu1 }
 0x370   : > { %v450_v9 = vadd.f32 %v447_v7, %v1188_v26 }
 0x372   : > { %451 = vst [vmem:[%s241_s20] sm:$0xff] %v450_v9 }
 0x373   : > { %900 = shalt.err (!%p897_p2)
}
 0x374   : > { %s901_s29 = scalar_lea.hbm %s1217_s7, 128  ;;  %s905_s5 = scalar_lea.hbm %s1265_s4, 256 }
 0x375   : > { %p902_p13 = scmp.ne.s32.totalorder %s1217_s7, %s901_s29  ;;  %p906_p4 = scmp.lt.u32.totalorder %s1217_s7, %s1265_s4 }
 0x376   : > { %p907_p5 = scmp.lt.u32.totalorder %s905_s5, %s901_s29  ;;  %p909_p11 = scmp.lt.u32.totalorder %s901_s29, %s1217_s7 }
 0x377   : > { %p903_p6 = pnand %p902_p13, %p1279_p0 }
 0x378   : > { %p908_p8 = por %p907_p5, %p906_p4 }
 0x379   : > { %p904_p10 = pneg %p903_p6 }
 0x37a   : > { %p910_p1 = por %p909_p11, %p908_p8 }
 0x37c   : > { %p911_p3 = pnand %p910_p1, %p904_p10 }
 0x37e   : > { %914 = shalt.err (!%p911_p3)
}
 0x37f   : > { %737 = dma.vmem_to_hbm [thread:$0]  (%p1279_p0), %s1219_s28, 128, %s1217_s7, %s453_s8  }
 0x380 PF: > { %s478_s10 = sand.u32 1, %s945_s15   ;;  %p1280_p7 = scmp.ne.s32.totalorder %s1270_s22, 0 }
 0x381   : > { %p1281_p9 = scmp.ge.s32.totalorder %s957_s18, 2  ;;  %s479_s24 = scalar_lea.sflag [#allocation4], %s478_s10 }
 0x383   : > { %p751_p12 = pnand %p1281_p9, %p1280_p7 }
 0x385   : > { %940 = dma.done.wait (!%p751_p12), %s479_s24, 128  }
 0x386   : > { %942 = vsyncadd (!%p751_p12), %s479_s24, 4294967168  ;;  %p18_p2 = scmp.ge.s32.totalorder %s1103_s9, 4   ;;  %s1282_s15 = smov %s949_s16 }
 0x387   : > { %s1283_s16 = smov %s953_s17  ;;  %s1284_s17 = smov %s1119_s14 }
 0x388   : > { %s1285_s18 = smov %s1103_s9  ;;  %20 = sbr.rel (!%p18_p2) target bundleno = 6 (0x6), region = 89 }
 0x38f   :  { %484 = vsyncpa [#allocation3], 1 }
 0x390   :  { %486 = vsyncpa [#allocation3 + $0x1], 1 }
 0x391   :  { %487 = vsyncpa [#allocation6], 1 }
 0x392   :  { %488 = vsyncpa [#allocation4], 1 }
 0x393   :  { %490 = vsyncpa [#allocation4 + $0x1], 1 }

</bundles_post_ra>
